<compile_context>
chip_gen: v6e
topology: v6e:2x2x1
jax: 0.10.0
libtpu: 0.0.40
codegen_flags: <defaults>
</compile_context>

<pallas_src>
import functools

import jax
import jax.numpy as jnp
from jax import lax
from jax.experimental import pallas as pl
from jax.experimental.pallas import tpu as pltpu


def _round_up(x, m):
    return (x + m - 1) // m * m


def _supcon_kernel(feat_ref, text_ref, label_ref, out_ref, *, margin, num_classes):
    feats = feat_ref[...]            # [TB, Dp]  (bf16 or f32)
    text_t = text_ref[...]           # [Dp, Cp]  pre-transposed, zero-padded
    labels = label_ref[...]          # [TB, 1]   int32

    # feats @ text_emb.T on the MXU with an f32 accumulator. The reference's
    # per-row feature L2-normalization and the 100x scale are positive per-row
    # scalings that the row-wise L2 normalization below cancels exactly, so
    # they are elided. (Note: sum-of-squares is therefore taken on the
    # UNnormalized logits; fine for typical data, could only overflow f32 for
    # pathologically large feature magnitudes.)
    logits = jnp.dot(feats, text_t, preferred_element_type=jnp.float32)   # [TB, Cp] f32

    # Row-wise L2 normalization: rsqrt (EUP slot) + multiply, no divide.
    # No epsilon, matching PyTorch (a zero row -> inf/NaN there too).
    inv_norm = lax.rsqrt(jnp.sum(logits * logits, axis=-1, keepdims=True))
    logits = logits * inv_norm

    # In-kernel one-hot: class-id iota along lanes vs. the integer labels.
    cls = lax.broadcasted_iota(jnp.int32, logits.shape, 1)                # [TB, Cp]
    is_target = cls == labels

    # f32 epilogue on every generation (v5e has no bf16 VPU/EUP path).
    vals = jnp.where(is_target, 1.0 - logits, logits - margin)
    vals = jnp.maximum(vals, 0.0)

    # Zero the zero-padded class columns (exact for any sign of margin).
    if num_classes < logits.shape[1]:
        vals = jnp.where(cls < num_classes, vals, 0.0)

    # Per-row partial sums; the tiny final reduction happens in the wrapper.
    out_ref[...] = jnp.sum(vals, axis=1, keepdims=True)                   # [TB, 1]


def supcon_loss(features, text_emb, labels, *, num_classes, margin,
                block_b=None, use_bf16=True):
    """features: [B, D], text_emb: [C, D], labels: [B] int. Returns scalar loss."""
    B, D = features.shape
    C, Dt = text_emb.shape
    assert D == Dt and C == num_classes

    # ---- generation-aware sizing -------------------------------------------
    try:
        vmem_cap = int(getattr(pltpu.get_tpu_info(), "vmem_capacity_bytes"))
    except Exception:
        vmem_cap = 64 << 20                       # conservative (v7x-sized) fallback
    big_vmem = vmem_cap >= (100 << 20)            # v5e/v6e: 128 MiB; v7x: 64 MiB
    cap_limit = (100 << 20) if big_vmem else (48 << 20)

    compute_dtype = jnp.bfloat16 if use_bf16 else jnp.float32
    item = jnp.dtype(compute_dtype).itemsize
    row_mult = 16 if compute_dtype == jnp.bfloat16 else 8    # sublane packing

    # Zero-pad D and C to lane-native multiples of 128. Exact: zero feature
    # columns / zero class columns contribute nothing to the matmul or the row
    # norm, and padded class columns are masked in-kernel before the sum.
    d_pad = _round_up(D, 128)
    c_pad = _round_up(C, 128)

    if block_b is None:
        block_b = 1024 if big_vmem else 512
    tb = max(row_mult, (int(block_b) // row_mult) * row_mult)
    tb = min(tb, _round_up(B, row_mult))

    # Conservative VMEM estimate: double-buffered feature/label/out blocks,
    # the text table (counted double-buffered even though we request single
    # buffering), and ~6 f32 epilogue temporaries of [tb, c_pad].
    def _vmem_estimate(tb_):
        return (2 * tb_ * d_pad * item            # feature tiles (x2 buffers)
                + 2 * d_pad * c_pad * item        # text table (worst case x2)
                + 2 * tb_ * 4                     # label tiles (int32)
                + 6 * tb_ * c_pad * 4             # f32 epilogue temporaries
                + 2 * tb_ * 4                     # output tiles
                + (2 << 20))                      # slack

    # Shrink the batch tile (not the limit) until the estimate fits the cap.
    while tb > row_mult and _vmem_estimate(tb) > cap_limit:
        tb = max(row_mult, (tb // 2) // row_mult * row_mult)

    b_pad = _round_up(B, tb)
    num_tiles = b_pad // tb

    # v7x has 2 TensorCores: make sure the "parallel" batch axis has >= 2 grid
    # steps so both cores get work (no-op for tiny batches; v5e/v6e skip this).
    if (not big_vmem) and num_tiles == 1 and b_pad >= 2 * row_mult and tb >= 2 * row_mult:
        tb = (tb // 2) // row_mult * row_mult
        b_pad = _round_up(B, tb)
        num_tiles = b_pad // tb

    est = _vmem_estimate(tb)
    vmem_limit = int(max(est, 32 << 20))
    # TODO(synk): for resident tables that cannot fit even single-buffered
    # (very large C on v7x), switch to a C-tiled "arbitrary" grid axis with a
    # precomputed [D, D] Gram matrix for the row norms instead of raising the
    # limit further.

    # ---- input padding / layout --------------------------------------------
    feats_p = features
    if b_pad != B:
        # Pad batch rows with ones: padded rows stay finite and their per-row
        # sums are sliced off before the final reduction.
        feats_p = jnp.concatenate(
            [feats_p, jnp.ones((b_pad - B, D), feats_p.dtype)], axis=0)
        labels = jnp.concatenate(
            [labels, jnp.zeros((b_pad - B,), labels.dtype)], axis=0)
    if d_pad != D:
        feats_p = jnp.concatenate(
            [feats_p, jnp.zeros((b_pad, d_pad - D), feats_p.dtype)], axis=1)
    feats_p = feats_p.astype(compute_dtype)

    labels_2d = labels.reshape(b_pad, 1).astype(jnp.int32)

    # Pre-transposed, zero-padded text table: MXU RHS stays un-transposed in
    # the kernel and the logits lane dim (c_pad) is a lane-dense multiple of 128.
    text_t = jnp.transpose(text_emb)                                      # [D, C]
    text_t = jnp.pad(text_t, ((0, d_pad - D), (0, c_pad - C)))
    text_t = text_t.astype(compute_dtype)

    kernel = functools.partial(_supcon_kernel, margin=float(margin), num_classes=C)

    def _build(single_buffer_text):
        text_kwargs = dict(pipeline_mode=pl.Buffered(1)) if single_buffer_text else {}
        return pl.pallas_call(
            kernel,
            out_shape=jax.ShapeDtypeStruct((b_pad, 1), jnp.float32),
            grid=(num_tiles,),
            in_specs=[
                pl.BlockSpec((tb, d_pad), lambda i: (i, 0)),              # feature tile
                pl.BlockSpec((d_pad, c_pad), lambda i: (0, 0),            # resident text
                             **text_kwargs),
                pl.BlockSpec((tb, 1), lambda i: (i, 0)),                  # int labels tile
            ],
            out_specs=pl.BlockSpec((tb, 1), lambda i: (i, 0)),
            compiler_params=pltpu.CompilerParams(
                dimension_semantics=("parallel",),
                vmem_limit_bytes=vmem_limit,
            ),
        )

    try:
        # Constant index_map -> single-buffer the text table to free D*C bytes.
        per_row = _build(True)(feats_p, text_t, labels_2d)
    except Exception:
        # Fallback if this Pallas build rejects Buffered(1) on pallas_call.
        per_row = _build(False)(feats_p, text_t, labels_2d)

    # Drop padded rows, then the trivial final reduction in plain XLA.
    return jnp.sum(per_row[:B, 0])


def supcon_loss_ref(features, text_emb, labels, *, num_classes, margin):
    """Pure-JAX reference mirroring the PyTorch forward."""
    target = jax.nn.one_hot(labels, num_classes, dtype=jnp.float32)
    img = features / jnp.linalg.norm(features, axis=1, keepdims=True)
    logits = 100.0 * img.astype(jnp.float32) @ text_emb.T.astype(jnp.float32)
    logits = logits / jnp.linalg.norm(logits, axis=-1, keepdims=True)
    logits = jnp.where(target == 1.0, 1.0 - logits, logits - margin)
    logits = jnp.maximum(logits, 0.0)   # clamp(min=0)
    return jnp.sum(logits)


if __name__ == "__main__":
    # Small, module-consistent shapes: features [bsz, image_feats],
    # text_emb [num_class, image_feats], labels [bsz].
    bsz, feat_dim, num_classes = 8, 32, 8
    margin = 0.2

    key = jax.random.PRNGKey(0)
    kf, kt, kl = jax.random.split(key, 3)
    features = jax.random.normal(kf, (bsz, feat_dim), dtype=jnp.float32)
    # Deterministic "parameter": synthetic text embedding table (no checkpoint).
    text_emb = jax.random.normal(kt, (num_classes, feat_dim), dtype=jnp.float32)
    labels = jax.random.randint(kl, (bsz,), 0, num_classes, dtype=jnp.int32)

    ref = supcon_loss_ref(features, text_emb, labels,
                          num_classes=num_classes, margin=margin)

    # bf16 fast path (default): looser tolerance, bf16 inputs + f32 accumulation.
    loss_bf16 = jax.block_until_ready(
        supcon_loss(features, text_emb, labels,
                    num_classes=num_classes, margin=margin, use_bf16=True))
    assert jnp.allclose(loss_bf16, ref, rtol=2e-2, atol=2e-2), (loss_bf16, ref)

    # f32 path: tight tolerance against the reference.
    loss_f32 = jax.block_until_ready(
        supcon_loss(features, text_emb, labels,
                    num_classes=num_classes, margin=margin, use_bf16=False))
    assert jnp.allclose(loss_f32, ref, rtol=1e-4, atol=1e-4), (loss_f32, ref)

    print("KERNEL_OK")
</pallas_src>

<mosaic_0001>
module attributes {stable_mosaic.version = 11 : i64} {
  func.func @_supcon_kernel(%arg0: i32, %arg1: memref<16x128xbf16, #tpu.memory_space<vmem>>, %arg2: memref<128x128xbf16, #tpu.memory_space<vmem>>, %arg3: memref<16x1xi32, #tpu.memory_space<vmem>>, %arg4: memref<16x1xf32, #tpu.memory_space<vmem>>) attributes {dimension_semantics = [#tpu.dimension_semantics<parallel>], iteration_bounds = array<i64: 1>, scalar_prefetch = 0 : i64, scratch_operands = 0 : i64, tpu.core_type = #tpu.core_type<tc>, window_params = [{transform_indices = @transform_0, window_bounds = array<i64: 16, 128>}, {pipeline_mode = #tpu.pipeline_mode<synchronous>, transform_indices = @transform_1, window_bounds = array<i64: 128, 128>}, {transform_indices = @transform_2, window_bounds = array<i64: 16, 1>}, {transform_indices = @transform_3, window_bounds = array<i64: 16, 1>}]} {
    %c0 = arith.constant 0 : index
    %c0_0 = arith.constant 0 : index
    %0 = vector.load %arg1[%c0, %c0_0] : memref<16x128xbf16, #tpu.memory_space<vmem>>, vector<16x128xbf16>
    %c0_1 = arith.constant 0 : index
    %c0_2 = arith.constant 0 : index
    %1 = vector.load %arg2[%c0_1, %c0_2] : memref<128x128xbf16, #tpu.memory_space<vmem>>, vector<128x128xbf16>
    %c0_3 = arith.constant 0 : index
    %c0_4 = arith.constant 0 : index
    %2 = vector.load %arg3[%c0_3, %c0_4] : memref<16x1xi32, #tpu.memory_space<vmem>>, vector<16x1xi32>
    %cst = arith.constant dense<0.000000e+00> : vector<16x128xf32>
    %3 = tpu.matmul %0, %1, %cst {dimension_numbers = #tpu.dot_dimension_numbers<[1], [0], [0], [1], [0, 0, 1, 1], [], []>} : vector<16x128xbf16>, vector<128x128xbf16>, vector<16x128xf32> -> vector<16x128xf32>
    %4 = arith.mulf %3, %3 : vector<16x128xf32>
    %cst_5 = arith.constant dense<0.000000e+00> : vector<16xf32>
    %5 = vector.multi_reduction <add>, %4, %cst_5 [1] : vector<16x128xf32> to vector<16xf32>
    %6 = vector.shape_cast %5 : vector<16xf32> to vector<16x1xf32>
    %7 = math.rsqrt %6 : vector<16x1xf32>
    %8 = vector.broadcast %7 : vector<16x1xf32> to vector<16x128xf32>
    %9 = arith.mulf %3, %8 : vector<16x128xf32>
    %10 = tpu.iota {dimensions = array<i32: 1>} : vector<16x128xi32>
    %11 = vector.broadcast %2 : vector<16x1xi32> to vector<16x128xi32>
    %12 = arith.cmpi eq, %10, %11 : vector<16x128xi32>
    %cst_6 = arith.constant 1.000000e+00 : f32
    %13 = vector.broadcast %cst_6 : f32 to vector<16x128xf32>
    %14 = arith.subf %13, %9 : vector<16x128xf32>
    %cst_7 = arith.constant 2.000000e-01 : f32
    %15 = vector.broadcast %cst_7 : f32 to vector<16x128xf32>
    %16 = arith.subf %9, %15 : vector<16x128xf32>
    %17 = arith.select %12, %14, %16 : vector<16x128xi1>, vector<16x128xf32>
    %cst_8 = arith.constant 0.000000e+00 : f32
    %18 = vector.broadcast %cst_8 : f32 to vector<16x128xf32>
    %19 = arith.maximumf %17, %18 : vector<16x128xf32>
    %c8_i32 = arith.constant 8 : i32
    %20 = vector.broadcast %c8_i32 : i32 to vector<16x128xi32>
    %21 = arith.cmpi slt, %10, %20 : vector<16x128xi32>
    %cst_9 = arith.constant 0.000000e+00 : f32
    %22 = vector.broadcast %cst_9 : f32 to vector<16x128xf32>
    %23 = arith.select %21, %19, %22 : vector<16x128xi1>, vector<16x128xf32>
    %cst_10 = arith.constant dense<0.000000e+00> : vector<16xf32>
    %24 = vector.multi_reduction <add>, %23, %cst_10 [1] : vector<16x128xf32> to vector<16xf32>
    %25 = vector.shape_cast %24 : vector<16xf32> to vector<16x1xf32>
    %c0_11 = arith.constant 0 : index
    %c0_12 = arith.constant 0 : index
    %26 = vector.load %arg4[%c0_11, %c0_12] : memref<16x1xf32, #tpu.memory_space<vmem>>, vector<16x1xf32>
    tpu.vector_store %arg4[%c0_11, %c0_12], %25 {strides = array<i32>} : memref<16x1xf32, #tpu.memory_space<vmem>>, vector<16x1xf32>,
    return
  }
  func.func @transform_0(%arg0: i32) -> (i32, i32) {
    %c0_i32 = arith.constant 0 : i32
    %c0_i32_0 = arith.constant 0 : i32
    return %arg0, %c0_i32 : i32, i32
  }
  func.func @transform_1(%arg0: i32) -> (i32, i32) {
    %c0_i32 = arith.constant 0 : i32
    %c0_i32_0 = arith.constant 0 : i32
    %c0_i32_1 = arith.constant 0 : i32
    return %c0_i32, %c0_i32_0 : i32, i32
  }
  func.func @transform_2(%arg0: i32) -> (i32, i32) {
    %c0_i32 = arith.constant 0 : i32
    %c0_i32_0 = arith.constant 0 : i32
    return %arg0, %c0_i32 : i32, i32
  }
  func.func @transform_3(%arg0: i32) -> (i32, i32) {
    %c0_i32 = arith.constant 0 : i32
    %c0_i32_0 = arith.constant 0 : i32
    return %arg0, %c0_i32 : i32, i32
  }
}

module attributes {stable_mosaic.version = 11 : i64} {
  func.func @_supcon_kernel(%arg0: i32, %arg1: memref<16x128xbf16, #tpu.memory_space<vmem>>, %arg2: memref<128x128xbf16, #tpu.memory_space<vmem>>, %arg3: memref<16x1xi32, #tpu.memory_space<vmem>>, %arg4: memref<16x1xf32, #tpu.memory_space<vmem>>) attributes {dimension_semantics = [#tpu.dimension_semantics<parallel>], iteration_bounds = array<i64: 1>, scalar_prefetch = 0 : i64, scratch_operands = 0 : i64, tpu.core_type = #tpu.core_type<tc>, window_params = [{transform_indices = @transform_0, window_bounds = array<i64: 16, 128>}, {pipeline_mode = #tpu.pipeline_mode<synchronous>, transform_indices = @transform_1, window_bounds = array<i64: 128, 128>}, {transform_indices = @transform_2, window_bounds = array<i64: 16, 1>}, {transform_indices = @transform_3, window_bounds = array<i64: 16, 1>}]} {
    %c0 = arith.constant 0 : index
    %c0_0 = arith.constant 0 : index
    %0 = vector.load %arg1[%c0, %c0_0] : memref<16x128xbf16, #tpu.memory_space<vmem>>, vector<16x128xbf16>
    %c0_1 = arith.constant 0 : index
    %c0_2 = arith.constant 0 : index
    %1 = vector.load %arg2[%c0_1, %c0_2] : memref<128x128xbf16, #tpu.memory_space<vmem>>, vector<128x128xbf16>
    %c0_3 = arith.constant 0 : index
    %c0_4 = arith.constant 0 : index
    %2 = vector.load %arg3[%c0_3, %c0_4] : memref<16x1xi32, #tpu.memory_space<vmem>>, vector<16x1xi32>
    %cst = arith.constant dense<0.000000e+00> : vector<16x128xf32>
    %3 = tpu.matmul %0, %1, %cst {dimension_numbers = #tpu.dot_dimension_numbers<[1], [0], [0], [1], [0, 0, 1, 1], [], []>} : vector<16x128xbf16>, vector<128x128xbf16>, vector<16x128xf32> -> vector<16x128xf32>
    %4 = arith.mulf %3, %3 : vector<16x128xf32>
    %cst_5 = arith.constant dense<0.000000e+00> : vector<16xf32>
    %5 = vector.multi_reduction <add>, %4, %cst_5 [1] : vector<16x128xf32> to vector<16xf32>
    %6 = vector.shape_cast %5 : vector<16xf32> to vector<16x1xf32>
    %7 = math.rsqrt %6 : vector<16x1xf32>
    %8 = vector.broadcast %7 : vector<16x1xf32> to vector<16x128xf32>
    %9 = arith.mulf %3, %8 : vector<16x128xf32>
    %10 = tpu.iota {dimensions = array<i32: 1>} : vector<16x128xi32>
    %11 = vector.broadcast %2 : vector<16x1xi32> to vector<16x128xi32>
    %12 = arith.cmpi eq, %10, %11 : vector<16x128xi32>
    %cst_6 = arith.constant 1.000000e+00 : f32
    %13 = vector.broadcast %cst_6 : f32 to vector<16x128xf32>
    %14 = arith.subf %13, %9 : vector<16x128xf32>
    %cst_7 = arith.constant 2.000000e-01 : f32
    %15 = vector.broadcast %cst_7 : f32 to vector<16x128xf32>
    %16 = arith.subf %9, %15 : vector<16x128xf32>
    %17 = arith.select %12, %14, %16 : vector<16x128xi1>, vector<16x128xf32>
    %cst_8 = arith.constant 0.000000e+00 : f32
    %18 = vector.broadcast %cst_8 : f32 to vector<16x128xf32>
    %19 = arith.maximumf %17, %18 : vector<16x128xf32>
    %c8_i32 = arith.constant 8 : i32
    %20 = vector.broadcast %c8_i32 : i32 to vector<16x128xi32>
    %21 = arith.cmpi slt, %10, %20 : vector<16x128xi32>
    %cst_9 = arith.constant 0.000000e+00 : f32
    %22 = vector.broadcast %cst_9 : f32 to vector<16x128xf32>
    %23 = arith.select %21, %19, %22 : vector<16x128xi1>, vector<16x128xf32>
    %cst_10 = arith.constant dense<0.000000e+00> : vector<16xf32>
    %24 = vector.multi_reduction <add>, %23, %cst_10 [1] : vector<16x128xf32> to vector<16xf32>
    %25 = vector.shape_cast %24 : vector<16xf32> to vector<16x1xf32>
    %c0_11 = arith.constant 0 : index
    %c0_12 = arith.constant 0 : index
    %26 = vector.load %arg4[%c0_11, %c0_12] : memref<16x1xf32, #tpu.memory_space<vmem>>, vector<16x1xf32>
    tpu.vector_store %arg4[%c0_11, %c0_12], %25 {strides = array<i32>} : memref<16x1xf32, #tpu.memory_space<vmem>>, vector<16x1xf32>,
    return
  }
  func.func @transform_0(%arg0: i32) -> (i32, i32) {
    %c0_i32 = arith.constant 0 : i32
    %c0_i32_0 = arith.constant 0 : i32
    return %arg0, %c0_i32 : i32, i32
  }
  func.func @transform_1(%arg0: i32) -> (i32, i32) {
    %c0_i32 = arith.constant 0 : i32
    %c0_i32_0 = arith.constant 0 : i32
    %c0_i32_1 = arith.constant 0 : i32
    return %c0_i32, %c0_i32_0 : i32, i32
  }
  func.func @transform_2(%arg0: i32) -> (i32, i32) {
    %c0_i32 = arith.constant 0 : i32
    %c0_i32_0 = arith.constant 0 : i32
    return %arg0, %c0_i32 : i32, i32
  }
  func.func @transform_3(%arg0: i32) -> (i32, i32) {
    %c0_i32 = arith.constant 0 : i32
    %c0_i32_0 = arith.constant 0 : i32
    return %arg0, %c0_i32 : i32, i32
  }
}

</mosaic_0001>

<bundles_post_ra>
// kernel: tpu_custom_call.1
= control target key start
LH: loop header
LB: loop body
LE: loop exit
PB: predicated region body
PF: predicated region fallthrough
CT: control target
= control target key end

     0   :  { %8 = vsyncpa [#allocation3], 0  ;;  %s270_s12 = smov [#allocation2]   ;;  %s314_s0 = inlined_call_operand.vmem [shape: bf16[16,128], index: 0, kind: input, shape index: {}]   ;;  %s315_s1 = inlined_call_operand.hbm [shape: bf16[128,128], index: 1, kind: input, shape index: {}]   ;;  %s316_s2 = inlined_call_operand.vmem [shape: s32[16,1], index: 2, kind: input, shape index: {}]   ;;  %s317_s3 = inlined_call_operand.vmem [shape: f32[16,1], index: 3, kind: output, shape index: {}]  }
   0x1   :  { %s16_s13 = sshll.u32 %s270_s12, 4  ;;  %s17_s13 = int_to_ptr.vmem [resolvable:$true] %s16_s13 }
   0x2   :  { %s256_s14 = scalar_lea.vmem %s17_s13, 1024  ;;  %p261_p1 = scmp.lt.s32.totalorder %s17_s13, %s17_s13 }
   0x3   :  { %p257_p0 = scmp.ne.s32.totalorder %s17_s13, %s256_s14  ;;  %p262_p2 = scmp.lt.s32.totalorder %s256_s14, %s256_s14 }
   0x5   :  { %p263_p3 = por %p262_p2, %p261_p1 }
   0x7   :  { %p264_p4 = pnand %p263_p3, %p257_p0 }
   0x9   :  { %267 = shalt.err (!%p264_p4)
}
   0xa   :  { %s271_s15 = smov 64   ;;  %s272_s16 = smov 4  }
   0xb   :  { %22 = dma.hbm_to_vmem [thread:$0]  %s315_s1, 1024, %s17_s13, [#allocation3], %s271_s15, %s271_s15, %s272_s16  }
   0xc   :  { %268 = dma.done.wait [#allocation3], 1024  }
   0xd   :  { %269 = vsyncadd [#allocation3], 4294966272  ;;  %v273_v0 = vmov 0.0   ;;  %vm274_vm0 = vmmov 0   ;;  %v235_v1 = vld [vmem:[#allocation2 + $0x38] sm:$0xff]   ;;  %v236_v2 = vld [vmem:[#allocation2 + $0x30] sm:$0xff]   ;;  %v154_v21 = vlaneseq }
   0xe   :  { %207 = vmatprep.subr.bf16.mxu0 %v273_v0  ;;  %223 = vmatprep.mubr.msk.bf16.mxu0 %vm274_vm0, %v273_v0  ;;  %v237_v3 = vld [vmem:[#allocation2 + $0x28] sm:$0xff]   ;;  %v238_v4 = vld [vmem:[#allocation2 + $0x20] sm:$0xff]   ;;  %v239_v5 = vld [vmem:[#allocation2 + $0x18] sm:$0xff]   ;;  %v275_v11 = vmov 0   ;;  %vm179_vm4 = vcmask 7168  }
   0xf   :  { %208 = vmatpush3.bf16.msra.mxu0 %v235_v1  ;;  %v240_v6 = vld [vmem:[#allocation2 + $0x10] sm:$0xff]   ;;  %v241_v7 = vld [vmem:[#allocation2 + $0x8] sm:$0xff]   ;;  %v242_v8 = vld [vmem:[#allocation2] sm:$0xff]   ;;  %233 = vset.pattern.permute.xlu1 %v275_v11  ;;  %v155_v22 = vand.u32 127, %v154_v21 }
  0x10   :  { %209 = vmatprep.subr.bf16.mxu0 %v273_v0  ;;  %v243_v9 = vld [vmem:[%s314_s0] sm:$0xff]   ;;  %234 = vset.pattern.permute.xlu0 %v275_v11  ;;  %v48_v12 = vld [vmem:[%s316_s2 + $0x8] sm:$0xff] }
  0x11   :  { %v47_v10 = vld [vmem:[%s316_s2] sm:$0xff]  ;;  %vm172_vm2 = vcmp.lt.s32.totalorder %v155_v22, 8 }
  0x12   :  { %157 = vperm.xlu1 %233, %v47_v10  }
  0x13   :  { %210 = vmatpush3.bf16.msra.mxu0 %v236_v2 }
  0x14   :  { %211 = vmatprep.subr.bf16.mxu0 %v273_v0 }
  0x16   :  { %160 = vperm.xlu1 %233, %v48_v12  }
  0x17   :  { %212 = vmatpush3.bf16.msra.mxu0 %v237_v3 }
  0x18   :  { %213 = vmatprep.subr.bf16.mxu0 %v273_v0 }
  0x1b   :  { %214 = vmatpush3.bf16.msra.mxu0 %v238_v4 }
  0x1c   :  { %215 = vmatprep.subr.bf16.mxu0 %v273_v0 }
  0x1f   :  { %216 = vmatpush3.bf16.msra.mxu0 %v239_v5 }
  0x20   :  { %217 = vmatprep.subr.bf16.mxu0 %v273_v0 }
  0x23   :  { %218 = vmatpush3.bf16.msra.mxu0 %v240_v6 }
  0x24   :  { %219 = vmatprep.subr.bf16.mxu0 %v273_v0 }
  0x27   :  { %220 = vmatpush3.bf16.msra.mxu0 %v241_v7 }
  0x28   :  { %221 = vmatprep.subr.bf16.mxu0 %v273_v0 }
  0x2b   :  { %222 = vmatpush3.bf16.msra.mxu0 %v242_v8 }
  0x2e   :  { %224 = vmatmul.mubr.bf16.vlgmr.msra.gmra.mxu0 %v243_v9 }
  0x8d   :  { %v158_v23 = vpop.permute.xlu1 %157 }
  0x8e   :  { %vm162_vm1 = vcmp.eq.s32.totalorder %v155_v22, %v158_v23 }
  0x91   :  { %v161_v29 = vpop.permute.xlu1 %160 }
  0x92   :  { %vm163_vm3 = vcmp.eq.s32.totalorder %v155_v22, %v161_v29 }
  0xee   :  { %v137_v13 = vpop.f32.mrf.mxu0 }
  0xef   :  { %v144_v14 = vmul.f32 %v137_v13, %v137_v13 }
  0xf0   :  { %v225_v15 = vpop.f32.mrf.mxu0 }
  0xf1   :  { %146 = vadd.xlane.f32.xlu0 %v144_v14 }
  0xf2   :  { %v140_v16 = vpop.f32.mrf.mxu0 }
  0xf3   :  { %v145_v17 = vmul.f32 %v140_v16, %v140_v16 }
  0xf4   :  { %v226_v18 = vpop.f32.mrf.mxu0 }
  0xf5   :  { %148 = vadd.xlane.f32.xlu0 %v145_v17 }
 0x17a   :  { %v147_v19 = vpop.xlane.xlu0 %146 }
 0x17b   :  { %244 = vrsqrt.f32 %v147_v19 }
 0x17e   :  { %v149_v20 = vpop.xlane.xlu0 %148 }
 0x17f   :  { %246 = vrsqrt.f32 %v149_v20 }
 0x188   :  { %v245_v24 = vpop.eup %244 }
 0x189   :  { %v152_v25 = vmul.f32 %v245_v24, %v137_v13 }
 0x18b   :  { %v164_v26 = vsub.f32 1.0, %v152_v25  ;;  %v196_v27 = vadd.f32 -0.2, %v152_v25 }
 0x18c   :  { %v247_v28 = vpop.eup %246 }
 0x18d   :  { %v168_v30 = vsel %vm162_vm1, %v164_v26, %v196_v27  ;;  %v153_v31 = vmul.f32 %v247_v28, %v140_v16 }
 0x18e   :  { %v170_v32 = vmax.f32 %v168_v30, 0.0 }
 0x18f   :  { %v165_v33 = vsub.f32 1.0, %v153_v31  ;;  %v197_v34 = vadd.f32 -0.2, %v153_v31 }
 0x190   :  { %v173_v35 = vsel %vm172_vm2, %v170_v32, 0.0 }
 0x191   :  { %175 = vadd.xlane.f32.xlu0 %v173_v35  ;;  %v169_v36 = vsel %vm163_vm3, %v165_v33, %v197_v34 }
 0x192   :  { %v171_v37 = vmax.f32 %v169_v36, 0.0 }
 0x194   :  { %v174_v38 = vsel %vm172_vm2, %v171_v37, 0.0 }
 0x195   :  { %177 = vadd.xlane.f32.xlu1 %v174_v38 }
 0x21a   :  { %v176_v39 = vpop.xlane.xlu0 %175 }
 0x21b   :  { %180 = vst.msk [vmem:[%s317_s3] sm:$0xff] %vm179_vm4, %v176_v39 }
 0x21e   :  { %v178_v40 = vpop.xlane.xlu1 %177 }
 0x21f   :  { %181 = vst.msk [vmem:[%s317_s3 + $0x8] sm:$0xff] %vm179_vm4, %v178_v40 }
 0x220   :  { %186 = vsyncpa [#allocation3], 1 }

// kernel: tpu_custom_call.1
= control target key start
LH: loop header
LB: loop body
LE: loop exit
PB: predicated region body
PF: predicated region fallthrough
CT: control target
= control target key end

     0   :  { %8 = vsyncpa [#allocation3], 0  ;;  %s270_s12 = smov [#allocation2]   ;;  %s314_s0 = inlined_call_operand.vmem [shape: bf16[16,128], index: 0, kind: input, shape index: {}]   ;;  %s315_s1 = inlined_call_operand.hbm [shape: bf16[128,128], index: 1, kind: input, shape index: {}]   ;;  %s316_s2 = inlined_call_operand.vmem [shape: s32[16,1], index: 2, kind: input, shape index: {}]   ;;  %s317_s3 = inlined_call_operand.vmem [shape: f32[16,1], index: 3, kind: output, shape index: {}]  }
   0x1   :  { %s16_s13 = sshll.u32 %s270_s12, 4  ;;  %s17_s13 = int_to_ptr.vmem [resolvable:$true] %s16_s13 }
   0x2   :  { %s256_s14 = scalar_lea.vmem %s17_s13, 1024  ;;  %p261_p1 = scmp.lt.s32.totalorder %s17_s13, %s17_s13 }
   0x3   :  { %p257_p0 = scmp.ne.s32.totalorder %s17_s13, %s256_s14  ;;  %p262_p2 = scmp.lt.s32.totalorder %s256_s14, %s256_s14 }
   0x5   :  { %p263_p3 = por %p262_p2, %p261_p1 }
   0x7   :  { %p264_p4 = pnand %p263_p3, %p257_p0 }
   0x9   :  { %267 = shalt.err (!%p264_p4)
}
   0xa   :  { %s271_s15 = smov 64   ;;  %s272_s16 = smov 4  }
   0xb   :  { %22 = dma.hbm_to_vmem [thread:$0]  %s315_s1, 1024, %s17_s13, [#allocation3], %s271_s15, %s271_s15, %s272_s16  }
   0xc   :  { %268 = dma.done.wait [#allocation3], 1024  }
   0xd   :  { %269 = vsyncadd [#allocation3], 4294966272  ;;  %v273_v0 = vmov 0.0   ;;  %vm274_vm0 = vmmov 0   ;;  %v235_v1 = vld [vmem:[#allocation2 + $0x38] sm:$0xff]   ;;  %v236_v2 = vld [vmem:[#allocation2 + $0x30] sm:$0xff]   ;;  %v154_v21 = vlaneseq }
   0xe   :  { %207 = vmatprep.subr.bf16.mxu0 %v273_v0  ;;  %223 = vmatprep.mubr.msk.bf16.mxu0 %vm274_vm0, %v273_v0  ;;  %v237_v3 = vld [vmem:[#allocation2 + $0x28] sm:$0xff]   ;;  %v238_v4 = vld [vmem:[#allocation2 + $0x20] sm:$0xff]   ;;  %v239_v5 = vld [vmem:[#allocation2 + $0x18] sm:$0xff]   ;;  %v275_v11 = vmov 0   ;;  %vm179_vm4 = vcmask 7168  }
   0xf   :  { %208 = vmatpush3.bf16.msra.mxu0 %v235_v1  ;;  %v240_v6 = vld [vmem:[#allocation2 + $0x10] sm:$0xff]   ;;  %v241_v7 = vld [vmem:[#allocation2 + $0x8] sm:$0xff]   ;;  %v242_v8 = vld [vmem:[#allocation2] sm:$0xff]   ;;  %233 = vset.pattern.permute.xlu1 %v275_v11  ;;  %v155_v22 = vand.u32 127, %v154_v21 }
  0x10   :  { %209 = vmatprep.subr.bf16.mxu0 %v273_v0  ;;  %v243_v9 = vld [vmem:[%s314_s0] sm:$0xff]   ;;  %234 = vset.pattern.permute.xlu0 %v275_v11  ;;  %v48_v12 = vld [vmem:[%s316_s2 + $0x8] sm:$0xff] }
  0x11   :  { %v47_v10 = vld [vmem:[%s316_s2] sm:$0xff]  ;;  %vm172_vm2 = vcmp.lt.s32.totalorder %v155_v22, 8 }
  0x12   :  { %157 = vperm.xlu1 %233, %v47_v10  }
  0x13   :  { %210 = vmatpush3.bf16.msra.mxu0 %v236_v2 }
  0x14   :  { %211 = vmatprep.subr.bf16.mxu0 %v273_v0 }
  0x16   :  { %160 = vperm.xlu1 %233, %v48_v12  }
  0x17   :  { %212 = vmatpush3.bf16.msra.mxu0 %v237_v3 }
  0x18   :  { %213 = vmatprep.subr.bf16.mxu0 %v273_v0 }
  0x1b   :  { %214 = vmatpush3.bf16.msra.mxu0 %v238_v4 }
  0x1c   :  { %215 = vmatprep.subr.bf16.mxu0 %v273_v0 }
  0x1f   :  { %216 = vmatpush3.bf16.msra.mxu0 %v239_v5 }
  0x20   :  { %217 = vmatprep.subr.bf16.mxu0 %v273_v0 }
  0x23   :  { %218 = vmatpush3.bf16.msra.mxu0 %v240_v6 }
  0x24   :  { %219 = vmatprep.subr.bf16.mxu0 %v273_v0 }
  0x27   :  { %220 = vmatpush3.bf16.msra.mxu0 %v241_v7 }
  0x28   :  { %221 = vmatprep.subr.bf16.mxu0 %v273_v0 }
  0x2b   :  { %222 = vmatpush3.bf16.msra.mxu0 %v242_v8 }
  0x2e   :  { %224 = vmatmul.mubr.bf16.vlgmr.msra.gmra.mxu0 %v243_v9 }
  0x8d   :  { %v158_v23 = vpop.permute.xlu1 %157 }
  0x8e   :  { %vm162_vm1 = vcmp.eq.s32.totalorder %v155_v22, %v158_v23 }
  0x91   :  { %v161_v29 = vpop.permute.xlu1 %160 }
  0x92   :  { %vm163_vm3 = vcmp.eq.s32.totalorder %v155_v22, %v161_v29 }
  0xee   :  { %v137_v13 = vpop.f32.mrf.mxu0 }
  0xef   :  { %v144_v14 = vmul.f32 %v137_v13, %v137_v13 }
  0xf0   :  { %v225_v15 = vpop.f32.mrf.mxu0 }
  0xf1   :  { %146 = vadd.xlane.f32.xlu0 %v144_v14 }
  0xf2   :  { %v140_v16 = vpop.f32.mrf.mxu0 }
  0xf3   :  { %v145_v17 = vmul.f32 %v140_v16, %v140_v16 }
  0xf4   :  { %v226_v18 = vpop.f32.mrf.mxu0 }
  0xf5   :  { %148 = vadd.xlane.f32.xlu0 %v145_v17 }
 0x17a   :  { %v147_v19 = vpop.xlane.xlu0 %146 }
 0x17b   :  { %244 = vrsqrt.f32 %v147_v19 }
 0x17e   :  { %v149_v20 = vpop.xlane.xlu0 %148 }
 0x17f   :  { %246 = vrsqrt.f32 %v149_v20 }
 0x188   :  { %v245_v24 = vpop.eup %244 }
 0x189   :  { %v152_v25 = vmul.f32 %v245_v24, %v137_v13 }
 0x18b   :  { %v164_v26 = vsub.f32 1.0, %v152_v25  ;;  %v196_v27 = vadd.f32 -0.2, %v152_v25 }
 0x18c   :  { %v247_v28 = vpop.eup %246 }
 0x18d   :  { %v168_v30 = vsel %vm162_vm1, %v164_v26, %v196_v27  ;;  %v153_v31 = vmul.f32 %v247_v28, %v140_v16 }
 0x18e   :  { %v170_v32 = vmax.f32 %v168_v30, 0.0 }
 0x18f   :  { %v165_v33 = vsub.f32 1.0, %v153_v31  ;;  %v197_v34 = vadd.f32 -0.2, %v153_v31 }
 0x190   :  { %v173_v35 = vsel %vm172_vm2, %v170_v32, 0.0 }
 0x191   :  { %175 = vadd.xlane.f32.xlu0 %v173_v35  ;;  %v169_v36 = vsel %vm163_vm3, %v165_v33, %v197_v34 }
 0x192   :  { %v171_v37 = vmax.f32 %v169_v36, 0.0 }
 0x194   :  { %v174_v38 = vsel %vm172_vm2, %v171_v37, 0.0 }
 0x195   :  { %177 = vadd.xlane.f32.xlu1 %v174_v38 }
 0x21a   :  { %v176_v39 = vpop.xlane.xlu0 %175 }
 0x21b   :  { %180 = vst.msk [vmem:[%s317_s3] sm:$0xff] %vm179_vm4, %v176_v39 }
 0x21e   :  { %v178_v40 = vpop.xlane.xlu1 %177 }
 0x21f   :  { %181 = vst.msk [vmem:[%s317_s3 + $0x8] sm:$0xff] %vm179_vm4, %v178_v40 }
 0x220   :  { %186 = vsyncpa [#allocation3], 1 }

</bundles_post_ra>
